<compile_context>
chip_gen: v6e
topology: v6e:2x2x1
jax: 0.10.0
libtpu: 0.0.40
codegen_flags: <defaults>
</compile_context>

<pallas_src>
import functools

import jax
import jax.numpy as jnp
import numpy as np
from jax import lax
from jax.experimental import pallas as pl
from jax.experimental.pallas import tpu as pltpu


def _pick_block_rows(n_rows, n_cols, target_bytes):
    """Largest multiple-of-8 row count giving ~target_bytes f32 per block."""
    rows = (target_bytes // 4) // max(n_cols, 1)
    rows = max(8, (rows // 8) * 8)
    return n_rows if rows >= n_rows else rows


def _bce_stats_kernel(pred_ref, gt_ref, mask_ref,
                      negloss_ref, pls_ref, pcnt_ref, msum_ref,
                      pls_acc, pcnt_acc, msum_acc,
                      *, n_rows, block_rows):
    """Elementwise BCE-with-logits + masking; lane-parallel running sums."""
    i = pl.program_id(0)

    @pl.when(i == 0)
    def _():
        pls_acc[...] = jnp.zeros_like(pls_acc)
        pcnt_acc[...] = jnp.zeros_like(pcnt_acc)
        msum_acc[...] = jnp.zeros_like(msum_acc)

    x = pred_ref[...].astype(jnp.float32)
    g = gt_ref[...].astype(jnp.float32)
    m = mask_ref[...].astype(jnp.float32)

    # Mask the ragged tail of the last block (only traced if the grid is
    # ragged).  Zeroing the inputs keeps every downstream value finite.
    if n_rows % block_rows != 0:
        row = lax.broadcasted_iota(jnp.int32, x.shape, 0)
        valid = row < (n_rows - i * block_rows)
        x = jnp.where(valid, x, 0.0)
        g = jnp.where(valid, g, 0.0)
        m = jnp.where(valid, m, 0.0)

    # BCE(sigmoid(x), g) via logits:  log p = min(x,0) - c,
    # log(1-p) = -max(x,0) - c,  c = log(1 + exp(-|x|)).
    # Keep torch.binary_cross_entropy's clamp of each log term at -100.
    c = jnp.log(1.0 + jnp.exp(-jnp.abs(x)))
    log_p = jnp.maximum(jnp.minimum(x, 0.0) - c, -100.0)
    log_1mp = jnp.maximum(-jnp.maximum(x, 0.0) - c, -100.0)
    loss = -(g * log_p + (1.0 - g) * log_1mp)

    positive = g * m
    negative = m - positive                      # == (1 - g) * m
    negloss_ref[...] = loss * negative

    pls_acc[...] += jnp.sum(loss * positive, axis=0, keepdims=True)
    pcnt_acc[...] += jnp.sum(positive, axis=0, keepdims=True)
    msum_acc[...] += jnp.sum(m, axis=0, keepdims=True)

    @pl.when(i == pl.num_programs(0) - 1)
    def _():
        pls_ref[...] = jnp.sum(pls_acc[...], axis=1, keepdims=True)
        pcnt_ref[...] = jnp.sum(pcnt_acc[...], axis=1, keepdims=True)
        msum_ref[...] = jnp.sum(msum_acc[...], axis=1, keepdims=True)


def _count_sum_kernel(tbits_ref, x_ref, cge_ref, cgt_ref, sgt_ref,
                      cge_acc, cgt_acc, sgt_acc,
                      *, n_rows, block_rows):
    """count(x >= t), count(x > t), sum(x where x > t) for t given as f32 bits.

    negloss >= 0, so comparing int32 bit patterns is order-equivalent to
    comparing float values.
    """
    i = pl.program_id(0)

    @pl.when(i == 0)
    def _():
        cge_acc[...] = jnp.zeros_like(cge_acc)
        cgt_acc[...] = jnp.zeros_like(cgt_acc)
        sgt_acc[...] = jnp.zeros_like(sgt_acc)

    x = x_ref[...]
    xb = pltpu.bitcast(x, jnp.int32)
    tb = tbits_ref[0]

    ge = xb >= tb
    gt = xb > tb
    if n_rows % block_rows != 0:
        row = lax.broadcasted_iota(jnp.int32, x.shape, 0)
        valid = row < (n_rows - i * block_rows)
        ge = jnp.logical_and(ge, valid)
        gt = jnp.logical_and(gt, valid)

    cge_acc[...] += jnp.sum(ge.astype(jnp.float32), axis=0, keepdims=True)
    cgt_acc[...] += jnp.sum(gt.astype(jnp.float32), axis=0, keepdims=True)
    sgt_acc[...] += jnp.sum(jnp.where(gt, x, 0.0), axis=0, keepdims=True)

    @pl.when(i == pl.num_programs(0) - 1)
    def _():
        cge_ref[...] = jnp.sum(cge_acc[...], axis=1, keepdims=True)
        cgt_ref[...] = jnp.sum(cgt_acc[...], axis=1, keepdims=True)
        sgt_ref[...] = jnp.sum(sgt_acc[...], axis=1, keepdims=True)


@functools.partial(jax.jit, static_argnames=("ohem",))
def ohem_loss(pred, gt, train_mask, ohem=True):
    negative_ratio = 3.0
    eps = 1e-4

    n, h, w = gt.shape
    r = n * h
    # (N,1,H,W) / (N,H,W) -> (N*H, W): pure contiguous reshapes, no HBM copy.
    pred2 = pred.reshape(r, w)
    gt2 = gt.reshape(r, w)
    mask2 = train_mask.reshape(r, w)

    # ---------------- stage 1: BCE, masking, global stats -------------------
    br_stats = _pick_block_rows(r, w, target_bytes=1 << 20)
    grid_stats = (pl.cdiv(r, br_stats),)
    tile_spec = pl.BlockSpec((br_stats, w), lambda i: (i, 0))
    scalar_out = pl.BlockSpec((1, 1), lambda i: (0, 0))

    negloss, pls, pcnt, msum = pl.pallas_call(
        functools.partial(_bce_stats_kernel, n_rows=r, block_rows=br_stats),
        out_shape=(
            jax.ShapeDtypeStruct((r, w), jnp.float32),
            jax.ShapeDtypeStruct((1, 1), jnp.float32),
            jax.ShapeDtypeStruct((1, 1), jnp.float32),
            jax.ShapeDtypeStruct((1, 1), jnp.float32),
        ),
        grid_spec=pltpu.PrefetchScalarGridSpec(
            num_scalar_prefetch=0,
            grid=grid_stats,
            in_specs=[tile_spec, tile_spec, tile_spec],
            out_specs=(tile_spec, scalar_out, scalar_out, scalar_out),
            scratch_shapes=[pltpu.VMEM((1, w), jnp.float32),
                            pltpu.VMEM((1, w), jnp.float32),
                            pltpu.VMEM((1, w), jnp.float32)]),
        compiler_params=pltpu.CompilerParams(
            dimension_semantics=("arbitrary",)),
        # TODO(synk): on v7x (2 TensorCores/chip) a leading "parallel" grid
        # axis with per-core partial sums could further raise HBM throughput.
    )(pred2, gt2, mask2)

    pos_loss_sum = pls[0, 0]
    pos_count = pcnt[0, 0]
    # negative.sum() == mask.sum() - (gt*mask).sum(); torch truncates to int.
    neg_count = jnp.floor(msum[0, 0] - pos_count)
    if ohem:
        neg_count = jnp.minimum(neg_count,
                                jnp.floor(pos_count * negative_ratio))
    k = neg_count  # float32, integer-valued, 0 <= k <= N*H*W

    # -------- stage 2: exact top-k sum of negloss, without a sort -----------
    br_cnt = _pick_block_rows(r, w, target_bytes=2 << 20)
    grid_cnt = (pl.cdiv(r, br_cnt),)
    count_sum = pl.pallas_call(
        functools.partial(_count_sum_kernel, n_rows=r, block_rows=br_cnt),
        out_shape=(jax.ShapeDtypeStruct((1, 1), jnp.float32),
                   jax.ShapeDtypeStruct((1, 1), jnp.float32),
                   jax.ShapeDtypeStruct((1, 1), jnp.float32)),
        grid_spec=pltpu.PrefetchScalarGridSpec(
            num_scalar_prefetch=1,
            grid=grid_cnt,
            in_specs=[pl.BlockSpec((br_cnt, w), lambda i, tb: (i, 0))],
            out_specs=(pl.BlockSpec((1, 1), lambda i, tb: (0, 0)),
                       pl.BlockSpec((1, 1), lambda i, tb: (0, 0)),
                       pl.BlockSpec((1, 1), lambda i, tb: (0, 0))),
            scratch_shapes=[pltpu.VMEM((1, w), jnp.float32),
                            pltpu.VMEM((1, w), jnp.float32),
                            pltpu.VMEM((1, w), jnp.float32)]),
        compiler_params=pltpu.CompilerParams(
            dimension_semantics=("arbitrary",)),
    )

    # Binary search over f32 bit patterns for t = k-th largest negloss value.
    # Invariant: count(x >= float(lo)) >= k, count(x >= float(hi)) < k.
    def bisect_body(_, carry):
        lo, hi = carry
        mid = lo + (hi - lo) // 2
        cge, _, _ = count_sum(mid.reshape(1), negloss)
        ok = cge[0, 0] >= k
        return jnp.where(ok, mid, lo), jnp.where(ok, hi, mid)

    lo0 = jnp.int32(0)                 # bits of 0.0 <= every negloss value
    hi0 = jnp.int32(0x7F800000)        # bits of +inf > every finite value
    lo, _ = lax.fori_loop(0, 32, bisect_body, (lo0, hi0))

    t = lax.bitcast_convert_type(lo, jnp.float32)   # exact k-th largest value
    _, cgt, sgt = count_sum(lo.reshape(1), negloss)
    # top-k sum = sum(x > t) + (k - count(x > t)) * t  (exact, handles ties).
    # TODO(synk): a multi-way (radix/histogram) split per pass would cut the
    # 32 counting passes to ~4 at the cost of more in-kernel compare work.
    neg_loss_sum = sgt[0, 0] + (k - cgt[0, 0]) * t
    neg_loss_sum = jnp.where(k > 0, neg_loss_sum, 0.0)

    return (pos_loss_sum + neg_loss_sum) / (pos_count + neg_count + eps)


def _reference_numpy(pred, gt, mask, ohem=True):
    pred = np.asarray(pred, np.float32).reshape(np.asarray(gt).shape)
    gt = np.asarray(gt, np.float32)
    mask = np.asarray(mask, np.float32)
    p = 1.0 / (1.0 + np.exp(-pred))
    with np.errstate(divide="ignore"):
        loss = -(gt * np.maximum(np.log(p), -100.0)
                 + (1.0 - gt) * np.maximum(np.log(1.0 - p), -100.0))
    positive = gt * mask
    negative = (1.0 - gt) * mask
    pos_loss = float((loss * positive).sum())
    pos_cnt = float(positive.sum())
    neg_cnt = int(negative.sum())
    if ohem:
        neg_cnt = min(neg_cnt, int(pos_cnt * 3.0))
    neg_sorted = np.sort((loss * negative).reshape(-1))[::-1]
    neg_loss = float(neg_sorted[:neg_cnt].sum())
    return (pos_loss + neg_loss) / (pos_cnt + neg_cnt + 1e-4)


if __name__ == "__main__":
    key = jax.random.PRNGKey(0)
    k1, k2, k3 = jax.random.split(key, 3)
    N, H, W = 2, 16, 16
    pred = jax.random.normal(k1, (N, 1, H, W), dtype=jnp.float32)
    gt = (jax.random.uniform(k2, (N, H, W)) < 0.3).astype(jnp.float32)
    train_mask = (jax.random.uniform(k3, (N, H, W)) < 0.8).astype(jnp.float32)

    out = ohem_loss(pred, gt, train_mask, ohem=True)
    out = jax.block_until_ready(out)

    ref = _reference_numpy(pred, gt, train_mask, ohem=True)
    np.testing.assert_allclose(float(out), ref, rtol=1e-4, atol=1e-5)
    print("KERNEL_OK")
</pallas_src>

<mosaic_0001>
module attributes {stable_mosaic.version = 11 : i64} {
  func.func @_count_sum_kernel(%arg0: i32, %arg1: memref<1xi32, #tpu.memory_space<smem>>, %arg2: memref<32x16xf32, #tpu.memory_space<vmem>>, %arg3: memref<1x1xf32, #tpu.memory_space<vmem>>, %arg4: memref<1x1xf32, #tpu.memory_space<vmem>>, %arg5: memref<1x1xf32, #tpu.memory_space<vmem>>, %arg6: memref<1x16xf32, #tpu.memory_space<vmem>>, %arg7: memref<1x16xf32, #tpu.memory_space<vmem>>, %arg8: memref<1x16xf32, #tpu.memory_space<vmem>>) attributes {dimension_semantics = [#tpu.dimension_semantics<arbitrary>], iteration_bounds = array<i64: 1>, scalar_prefetch = 1 : i64, scratch_operands = 3 : i64, tpu.core_type = #tpu.core_type<tc>, window_params = [{transform_indices = @transform_0, window_bounds = array<i64: 32, 16>}, {pipeline_mode = #tpu.pipeline_mode<synchronous>, transform_indices = @transform_1, window_bounds = array<i64: 1, 1>}, {pipeline_mode = #tpu.pipeline_mode<synchronous>, transform_indices = @transform_2, window_bounds = array<i64: 1, 1>}, {pipeline_mode = #tpu.pipeline_mode<synchronous>, transform_indices = @transform_3, window_bounds = array<i64: 1, 1>}]} {
    %c0_i32 = arith.constant 0 : i32
    %0 = arith.cmpi eq, %arg0, %c0_i32 : i32
    %1 = arith.extui %0 : i1 to i32
    %c0_i32_0 = arith.constant 0 : i32
    %2 = arith.cmpi ne, %1, %c0_i32_0 : i32
    scf.if %2 {
      %cst_20 = arith.constant 0.000000e+00 : f32
      %34 = vector.broadcast %cst_20 : f32 to vector<1x16xf32>
      %c0_21 = arith.constant 0 : index
      %c0_22 = arith.constant 0 : index
      %35 = vector.load %arg6[%c0_21, %c0_22] : memref<1x16xf32, #tpu.memory_space<vmem>>, vector<1x16xf32>
      tpu.vector_store %arg6[%c0_21, %c0_22], %34 {strides = array<i32>} : memref<1x16xf32, #tpu.memory_space<vmem>>, vector<1x16xf32>,
      %cst_23 = arith.constant 0.000000e+00 : f32
      %36 = vector.broadcast %cst_23 : f32 to vector<1x16xf32>
      %c0_24 = arith.constant 0 : index
      %c0_25 = arith.constant 0 : index
      %37 = vector.load %arg7[%c0_24, %c0_25] : memref<1x16xf32, #tpu.memory_space<vmem>>, vector<1x16xf32>
      tpu.vector_store %arg7[%c0_24, %c0_25], %36 {strides = array<i32>} : memref<1x16xf32, #tpu.memory_space<vmem>>, vector<1x16xf32>,
      %cst_26 = arith.constant 0.000000e+00 : f32
      %38 = vector.broadcast %cst_26 : f32 to vector<1x16xf32>
      %c0_27 = arith.constant 0 : index
      %c0_28 = arith.constant 0 : index
      %39 = vector.load %arg8[%c0_27, %c0_28] : memref<1x16xf32, #tpu.memory_space<vmem>>, vector<1x16xf32>
      tpu.vector_store %arg8[%c0_27, %c0_28], %38 {strides = array<i32>} : memref<1x16xf32, #tpu.memory_space<vmem>>, vector<1x16xf32>,
    } else {
    }
    %c0 = arith.constant 0 : index
    %c0_1 = arith.constant 0 : index
    %3 = vector.load %arg2[%c0, %c0_1] : memref<32x16xf32, #tpu.memory_space<vmem>>, vector<32x16xf32>
    %4 = tpu.bitcast %3 : vector<32x16xf32> -> vector<32x16xi32>
    %c0_2 = arith.constant 0 : index
    %5 = memref.load %arg1[%c0_2] : memref<1xi32, #tpu.memory_space<smem>>
    %6 = vector.broadcast %5 : i32 to vector<32x16xi32>
    %7 = arith.cmpi sge, %4, %6 : vector<32x16xi32>
    %8 = vector.broadcast %5 : i32 to vector<32x16xi32>
    %9 = arith.cmpi sgt, %4, %8 : vector<32x16xi32>
    %c0_3 = arith.constant 0 : index
    %c0_4 = arith.constant 0 : index
    %10 = vector.load %arg6[%c0_3, %c0_4] : memref<1x16xf32, #tpu.memory_space<vmem>>, vector<1x16xf32>
    %11 = arith.extui %7 : vector<32x16xi1> to vector<32x16xi32>
    %12 = arith.sitofp %11 : vector<32x16xi32> to vector<32x16xf32>
    %cst = arith.constant dense<0.000000e+00> : vector<16xf32>
    %13 = vector.multi_reduction <add>, %12, %cst [0] : vector<32x16xf32> to vector<16xf32>
    %14 = vector.shape_cast %13 : vector<16xf32> to vector<1x16xf32>
    %15 = arith.addf %10, %14 : vector<1x16xf32>
    %c0_5 = arith.constant 0 : index
    %c0_6 = arith.constant 0 : index
    %16 = vector.load %arg6[%c0_5, %c0_6] : memref<1x16xf32, #tpu.memory_space<vmem>>, vector<1x16xf32>
    tpu.vector_store %arg6[%c0_5, %c0_6], %15 {strides = array<i32>} : memref<1x16xf32, #tpu.memory_space<vmem>>, vector<1x16xf32>,
    %c0_7 = arith.constant 0 : index
    %c0_8 = arith.constant 0 : index
    %17 = vector.load %arg7[%c0_7, %c0_8] : memref<1x16xf32, #tpu.memory_space<vmem>>, vector<1x16xf32>
    %18 = arith.extui %9 : vector<32x16xi1> to vector<32x16xi32>
    %19 = arith.sitofp %18 : vector<32x16xi32> to vector<32x16xf32>
    %cst_9 = arith.constant dense<0.000000e+00> : vector<16xf32>
    %20 = vector.multi_reduction <add>, %19, %cst_9 [0] : vector<32x16xf32> to vector<16xf32>
    %21 = vector.shape_cast %20 : vector<16xf32> to vector<1x16xf32>
    %22 = arith.addf %17, %21 : vector<1x16xf32>
    %c0_10 = arith.constant 0 : index
    %c0_11 = arith.constant 0 : index
    %23 = vector.load %arg7[%c0_10, %c0_11] : memref<1x16xf32, #tpu.memory_space<vmem>>, vector<1x16xf32>
    tpu.vector_store %arg7[%c0_10, %c0_11], %22 {strides = array<i32>} : memref<1x16xf32, #tpu.memory_space<vmem>>, vector<1x16xf32>,
    %c0_12 = arith.constant 0 : index
    %c0_13 = arith.constant 0 : index
    %24 = vector.load %arg8[%c0_12, %c0_13] : memref<1x16xf32, #tpu.memory_space<vmem>>, vector<1x16xf32>
    %cst_14 = arith.constant 0.000000e+00 : f32
    %25 = vector.broadcast %cst_14 : f32 to vector<32x16xf32>
    %26 = arith.select %9, %3, %25 : vector<32x16xi1>, vector<32x16xf32>
    %cst_15 = arith.constant dense<0.000000e+00> : vector<16xf32>
    %27 = vector.multi_reduction <add>, %26, %cst_15 [0] : vector<32x16xf32> to vector<16xf32>
    %28 = vector.shape_cast %27 : vector<16xf32> to vector<1x16xf32>
    %29 = arith.addf %24, %28 : vector<1x16xf32>
    %c0_16 = arith.constant 0 : index
    %c0_17 = arith.constant 0 : index
    %30 = vector.load %arg8[%c0_16, %c0_17] : memref<1x16xf32, #tpu.memory_space<vmem>>, vector<1x16xf32>
    tpu.vector_store %arg8[%c0_16, %c0_17], %29 {strides = array<i32>} : memref<1x16xf32, #tpu.memory_space<vmem>>, vector<1x16xf32>,
    %c0_i32_18 = arith.constant 0 : i32
    %31 = arith.cmpi eq, %arg0, %c0_i32_18 : i32
    %32 = arith.extui %31 : i1 to i32
    %c0_i32_19 = arith.constant 0 : i32
    %33 = arith.cmpi ne, %32, %c0_i32_19 : i32
    scf.if %33 {
      %c0_20 = arith.constant 0 : index
      %c0_21 = arith.constant 0 : index
      %34 = vector.load %arg6[%c0_20, %c0_21] : memref<1x16xf32, #tpu.memory_space<vmem>>, vector<1x16xf32>
      %cst_22 = arith.constant dense<0.000000e+00> : vector<1xf32>
      %35 = vector.multi_reduction <add>, %34, %cst_22 [1] : vector<1x16xf32> to vector<1xf32>
      %36 = vector.shape_cast %35 : vector<1xf32> to vector<1x1xf32>
      %c0_23 = arith.constant 0 : index
      %c0_24 = arith.constant 0 : index
      %37 = vector.load %arg3[%c0_23, %c0_24] : memref<1x1xf32, #tpu.memory_space<vmem>>, vector<1x1xf32>
      tpu.vector_store %arg3[%c0_23, %c0_24], %36 {strides = array<i32>} : memref<1x1xf32, #tpu.memory_space<vmem>>, vector<1x1xf32>,
      %c0_25 = arith.constant 0 : index
      %c0_26 = arith.constant 0 : index
      %38 = vector.load %arg7[%c0_25, %c0_26] : memref<1x16xf32, #tpu.memory_space<vmem>>, vector<1x16xf32>
      %cst_27 = arith.constant dense<0.000000e+00> : vector<1xf32>
      %39 = vector.multi_reduction <add>, %38, %cst_27 [1] : vector<1x16xf32> to vector<1xf32>
      %40 = vector.shape_cast %39 : vector<1xf32> to vector<1x1xf32>
      %c0_28 = arith.constant 0 : index
      %c0_29 = arith.constant 0 : index
      %41 = vector.load %arg4[%c0_28, %c0_29] : memref<1x1xf32, #tpu.memory_space<vmem>>, vector<1x1xf32>
      tpu.vector_store %arg4[%c0_28, %c0_29], %40 {strides = array<i32>} : memref<1x1xf32, #tpu.memory_space<vmem>>, vector<1x1xf32>,
      %c0_30 = arith.constant 0 : index
      %c0_31 = arith.constant 0 : index
      %42 = vector.load %arg8[%c0_30, %c0_31] : memref<1x16xf32, #tpu.memory_space<vmem>>, vector<1x16xf32>
      %cst_32 = arith.constant dense<0.000000e+00> : vector<1xf32>
      %43 = vector.multi_reduction <add>, %42, %cst_32 [1] : vector<1x16xf32> to vector<1xf32>
      %44 = vector.shape_cast %43 : vector<1xf32> to vector<1x1xf32>
      %c0_33 = arith.constant 0 : index
      %c0_34 = arith.constant 0 : index
      %45 = vector.load %arg5[%c0_33, %c0_34] : memref<1x1xf32, #tpu.memory_space<vmem>>, vector<1x1xf32>
      tpu.vector_store %arg5[%c0_33, %c0_34], %44 {strides = array<i32>} : memref<1x1xf32, #tpu.memory_space<vmem>>, vector<1x1xf32>,
    } else {
    }
    return
  }
  func.func @transform_0(%arg0: i32, %arg1: memref<1xi32, #tpu.memory_space<smem>>) -> (i32, i32) {
    %c0_i32 = arith.constant 0 : i32
    %c0_i32_0 = arith.constant 0 : i32
    return %arg0, %c0_i32 : i32, i32
  }
  func.func @transform_1(%arg0: i32, %arg1: memref<1xi32, #tpu.memory_space<smem>>) -> (i32, i32) {
    %c0_i32 = arith.constant 0 : i32
    %c0_i32_0 = arith.constant 0 : i32
    %c0_i32_1 = arith.constant 0 : i32
    return %c0_i32, %c0_i32_0 : i32, i32
  }
  func.func @transform_2(%arg0: i32, %arg1: memref<1xi32, #tpu.memory_space<smem>>) -> (i32, i32) {
    %c0_i32 = arith.constant 0 : i32
    %c0_i32_0 = arith.constant 0 : i32
    %c0_i32_1 = arith.constant 0 : i32
    return %c0_i32, %c0_i32_0 : i32, i32
  }
  func.func @transform_3(%arg0: i32, %arg1: memref<1xi32, #tpu.memory_space<smem>>) -> (i32, i32) {
    %c0_i32 = arith.constant 0 : i32
    %c0_i32_0 = arith.constant 0 : i32
    %c0_i32_1 = arith.constant 0 : i32
    return %c0_i32, %c0_i32_0 : i32, i32
  }
}

module attributes {stable_mosaic.version = 11 : i64} {
  func.func @_bce_stats_kernel(%arg0: i32, %arg1: memref<32x16xf32, #tpu.memory_space<vmem>>, %arg2: memref<32x16xf32, #tpu.memory_space<vmem>>, %arg3: memref<32x16xf32, #tpu.memory_space<vmem>>, %arg4: memref<32x16xf32, #tpu.memory_space<vmem>>, %arg5: memref<1x1xf32, #tpu.memory_space<vmem>>, %arg6: memref<1x1xf32, #tpu.memory_space<vmem>>, %arg7: memref<1x1xf32, #tpu.memory_space<vmem>>, %arg8: memref<1x16xf32, #tpu.memory_space<vmem>>, %arg9: memref<1x16xf32, #tpu.memory_space<vmem>>, %arg10: memref<1x16xf32, #tpu.memory_space<vmem>>) attributes {dimension_semantics = [#tpu.dimension_semantics<arbitrary>], iteration_bounds = array<i64: 1>, scalar_prefetch = 0 : i64, scratch_operands = 3 : i64, tpu.core_type = #tpu.core_type<tc>, window_params = [{transform_indices = @transform_0, window_bounds = array<i64: 32, 16>}, {transform_indices = @transform_1, window_bounds = array<i64: 32, 16>}, {transform_indices = @transform_2, window_bounds = array<i64: 32, 16>}, {transform_indices = @transform_3, window_bounds = array<i64: 32, 16>}, {pipeline_mode = #tpu.pipeline_mode<synchronous>, transform_indices = @transform_4, window_bounds = array<i64: 1, 1>}, {pipeline_mode = #tpu.pipeline_mode<synchronous>, transform_indices = @transform_5, window_bounds = array<i64: 1, 1>}, {pipeline_mode = #tpu.pipeline_mode<synchronous>, transform_indices = @transform_6, window_bounds = array<i64: 1, 1>}]} {
    %c0_i32 = arith.constant 0 : i32
    %0 = arith.cmpi eq, %arg0, %c0_i32 : i32
    %1 = arith.extui %0 : i1 to i32
    %c0_i32_0 = arith.constant 0 : i32
    %2 = arith.cmpi ne, %1, %c0_i32_0 : i32
    scf.if %2 {
      %cst_33 = arith.constant 0.000000e+00 : f32
      %55 = vector.broadcast %cst_33 : f32 to vector<1x16xf32>
      %c0_34 = arith.constant 0 : index
      %c0_35 = arith.constant 0 : index
      %56 = vector.load %arg8[%c0_34, %c0_35] : memref<1x16xf32, #tpu.memory_space<vmem>>, vector<1x16xf32>
      tpu.vector_store %arg8[%c0_34, %c0_35], %55 {strides = array<i32>} : memref<1x16xf32, #tpu.memory_space<vmem>>, vector<1x16xf32>,
      %cst_36 = arith.constant 0.000000e+00 : f32
      %57 = vector.broadcast %cst_36 : f32 to vector<1x16xf32>
      %c0_37 = arith.constant 0 : index
      %c0_38 = arith.constant 0 : index
      %58 = vector.load %arg9[%c0_37, %c0_38] : memref<1x16xf32, #tpu.memory_space<vmem>>, vector<1x16xf32>
      tpu.vector_store %arg9[%c0_37, %c0_38], %57 {strides = array<i32>} : memref<1x16xf32, #tpu.memory_space<vmem>>, vector<1x16xf32>,
      %cst_39 = arith.constant 0.000000e+00 : f32
      %59 = vector.broadcast %cst_39 : f32 to vector<1x16xf32>
      %c0_40 = arith.constant 0 : index
      %c0_41 = arith.constant 0 : index
      %60 = vector.load %arg10[%c0_40, %c0_41] : memref<1x16xf32, #tpu.memory_space<vmem>>, vector<1x16xf32>
      tpu.vector_store %arg10[%c0_40, %c0_41], %59 {strides = array<i32>} : memref<1x16xf32, #tpu.memory_space<vmem>>, vector<1x16xf32>,
    } else {
    }
    %c0 = arith.constant 0 : index
    %c0_1 = arith.constant 0 : index
    %3 = vector.load %arg1[%c0, %c0_1] : memref<32x16xf32, #tpu.memory_space<vmem>>, vector<32x16xf32>
    %c0_2 = arith.constant 0 : index
    %c0_3 = arith.constant 0 : index
    %4 = vector.load %arg2[%c0_2, %c0_3] : memref<32x16xf32, #tpu.memory_space<vmem>>, vector<32x16xf32>
    %c0_4 = arith.constant 0 : index
    %c0_5 = arith.constant 0 : index
    %5 = vector.load %arg3[%c0_4, %c0_5] : memref<32x16xf32, #tpu.memory_space<vmem>>, vector<32x16xf32>
    %6 = math.absf %3 : vector<32x16xf32>
    %cst = arith.constant 0.000000e+00 : f32
    %7 = vector.broadcast %cst : f32 to vector<32x16xf32>
    %8 = arith.subf %7, %6 : vector<32x16xf32>
    %9 = math.exp %8 : vector<32x16xf32>
    %cst_6 = arith.constant 1.000000e+00 : f32
    %10 = vector.broadcast %cst_6 : f32 to vector<32x16xf32>
    %11 = arith.addf %10, %9 : vector<32x16xf32>
    %12 = math.log %11 : vector<32x16xf32>
    %cst_7 = arith.constant 0.000000e+00 : f32
    %13 = vector.broadcast %cst_7 : f32 to vector<32x16xf32>
    %14 = arith.minimumf %3, %13 : vector<32x16xf32>
    %15 = arith.subf %14, %12 : vector<32x16xf32>
    %cst_8 = arith.constant -1.000000e+02 : f32
    %16 = vector.broadcast %cst_8 : f32 to vector<32x16xf32>
    %17 = arith.maximumf %15, %16 : vector<32x16xf32>
    %cst_9 = arith.constant 0.000000e+00 : f32
    %18 = vector.broadcast %cst_9 : f32 to vector<32x16xf32>
    %19 = arith.maximumf %3, %18 : vector<32x16xf32>
    %cst_10 = arith.constant 0.000000e+00 : f32
    %20 = vector.broadcast %cst_10 : f32 to vector<32x16xf32>
    %21 = arith.subf %20, %19 : vector<32x16xf32>
    %22 = arith.subf %21, %12 : vector<32x16xf32>
    %cst_11 = arith.constant -1.000000e+02 : f32
    %23 = vector.broadcast %cst_11 : f32 to vector<32x16xf32>
    %24 = arith.maximumf %22, %23 : vector<32x16xf32>
    %25 = arith.mulf %4, %17 : vector<32x16xf32>
    %cst_12 = arith.constant 1.000000e+00 : f32
    %26 = vector.broadcast %cst_12 : f32 to vector<32x16xf32>
    %27 = arith.subf %26, %4 : vector<32x16xf32>
    %28 = arith.mulf %27, %24 : vector<32x16xf32>
    %29 = arith.addf %25, %28 : vector<32x16xf32>
    %cst_13 = arith.constant 0.000000e+00 : f32
    %30 = vector.broadcast %cst_13 : f32 to vector<32x16xf32>
    %31 = arith.subf %30, %29 : vector<32x16xf32>
    %32 = arith.mulf %4, %5 : vector<32x16xf32>
    %33 = arith.subf %5, %32 : vector<32x16xf32>
    %34 = arith.mulf %31, %33 : vector<32x16xf32>
    %c0_14 = arith.constant 0 : index
    %c0_15 = arith.constant 0 : index
    %35 = vector.load %arg4[%c0_14, %c0_15] : memref<32x16xf32, #tpu.memory_space<vmem>>, vector<32x16xf32>
    tpu.vector_store %arg4[%c0_14, %c0_15], %34 {strides = array<i32>} : memref<32x16xf32, #tpu.memory_space<vmem>>, vector<32x16xf32>,
    %c0_16 = arith.constant 0 : index
    %c0_17 = arith.constant 0 : index
    %36 = vector.load %arg8[%c0_16, %c0_17] : memref<1x16xf32, #tpu.memory_space<vmem>>, vector<1x16xf32>
    %37 = arith.mulf %31, %32 : vector<32x16xf32>
    %cst_18 = arith.constant dense<0.000000e+00> : vector<16xf32>
    %38 = vector.multi_reduction <add>, %37, %cst_18 [0] : vector<32x16xf32> to vector<16xf32>
    %39 = vector.shape_cast %38 : vector<16xf32> to vector<1x16xf32>
    %40 = arith.addf %36, %39 : vector<1x16xf32>
    %c0_19 = arith.constant 0 : index
    %c0_20 = arith.constant 0 : index
    %41 = vector.load %arg8[%c0_19, %c0_20] : memref<1x16xf32, #tpu.memory_space<vmem>>, vector<1x16xf32>
    tpu.vector_store %arg8[%c0_19, %c0_20], %40 {strides = array<i32>} : memref<1x16xf32, #tpu.memory_space<vmem>>, vector<1x16xf32>,
    %c0_21 = arith.constant 0 : index
    %c0_22 = arith.constant 0 : index
    %42 = vector.load %arg9[%c0_21, %c0_22] : memref<1x16xf32, #tpu.memory_space<vmem>>, vector<1x16xf32>
    %cst_23 = arith.constant dense<0.000000e+00> : vector<16xf32>
    %43 = vector.multi_reduction <add>, %32, %cst_23 [0] : vector<32x16xf32> to vector<16xf32>
    %44 = vector.shape_cast %43 : vector<16xf32> to vector<1x16xf32>
    %45 = arith.addf %42, %44 : vector<1x16xf32>
    %c0_24 = arith.constant 0 : index
    %c0_25 = arith.constant 0 : index
    %46 = vector.load %arg9[%c0_24, %c0_25] : memref<1x16xf32, #tpu.memory_space<vmem>>, vector<1x16xf32>
    tpu.vector_store %arg9[%c0_24, %c0_25], %45 {strides = array<i32>} : memref<1x16xf32, #tpu.memory_space<vmem>>, vector<1x16xf32>,
    %c0_26 = arith.constant 0 : index
    %c0_27 = arith.constant 0 : index
    %47 = vector.load %arg10[%c0_26, %c0_27] : memref<1x16xf32, #tpu.memory_space<vmem>>, vector<1x16xf32>
    %cst_28 = arith.constant dense<0.000000e+00> : vector<16xf32>
    %48 = vector.multi_reduction <add>, %5, %cst_28 [0] : vector<32x16xf32> to vector<16xf32>
    %49 = vector.shape_cast %48 : vector<16xf32> to vector<1x16xf32>
    %50 = arith.addf %47, %49 : vector<1x16xf32>
    %c0_29 = arith.constant 0 : index
    %c0_30 = arith.constant 0 : index
    %51 = vector.load %arg10[%c0_29, %c0_30] : memref<1x16xf32, #tpu.memory_space<vmem>>, vector<1x16xf32>
    tpu.vector_store %arg10[%c0_29, %c0_30], %50 {strides = array<i32>} : memref<1x16xf32, #tpu.memory_space<vmem>>, vector<1x16xf32>,
    %c0_i32_31 = arith.constant 0 : i32
    %52 = arith.cmpi eq, %arg0, %c0_i32_31 : i32
    %53 = arith.extui %52 : i1 to i32
    %c0_i32_32 = arith.constant 0 : i32
    %54 = arith.cmpi ne, %53, %c0_i32_32 : i32
    scf.if %54 {
      %c0_33 = arith.constant 0 : index
      %c0_34 = arith.constant 0 : index
      %55 = vector.load %arg8[%c0_33, %c0_34] : memref<1x16xf32, #tpu.memory_space<vmem>>, vector<1x16xf32>
      %cst_35 = arith.constant dense<0.000000e+00> : vector<1xf32>
      %56 = vector.multi_reduction <add>, %55, %cst_35 [1] : vector<1x16xf32> to vector<1xf32>
      %57 = vector.shape_cast %56 : vector<1xf32> to vector<1x1xf32>
      %c0_36 = arith.constant 0 : index
      %c0_37 = arith.constant 0 : index
      %58 = vector.load %arg5[%c0_36, %c0_37] : memref<1x1xf32, #tpu.memory_space<vmem>>, vector<1x1xf32>
      tpu.vector_store %arg5[%c0_36, %c0_37], %57 {strides = array<i32>} : memref<1x1xf32, #tpu.memory_space<vmem>>, vector<1x1xf32>,
      %c0_38 = arith.constant 0 : index
      %c0_39 = arith.constant 0 : index
      %59 = vector.load %arg9[%c0_38, %c0_39] : memref<1x16xf32, #tpu.memory_space<vmem>>, vector<1x16xf32>
      %cst_40 = arith.constant dense<0.000000e+00> : vector<1xf32>
      %60 = vector.multi_reduction <add>, %59, %cst_40 [1] : vector<1x16xf32> to vector<1xf32>
      %61 = vector.shape_cast %60 : vector<1xf32> to vector<1x1xf32>
      %c0_41 = arith.constant 0 : index
      %c0_42 = arith.constant 0 : index
      %62 = vector.load %arg6[%c0_41, %c0_42] : memref<1x1xf32, #tpu.memory_space<vmem>>, vector<1x1xf32>
      tpu.vector_store %arg6[%c0_41, %c0_42], %61 {strides = array<i32>} : memref<1x1xf32, #tpu.memory_space<vmem>>, vector<1x1xf32>,
      %c0_43 = arith.constant 0 : index
      %c0_44 = arith.constant 0 : index
      %63 = vector.load %arg10[%c0_43, %c0_44] : memref<1x16xf32, #tpu.memory_space<vmem>>, vector<1x16xf32>
      %cst_45 = arith.constant dense<0.000000e+00> : vector<1xf32>
      %64 = vector.multi_reduction <add>, %63, %cst_45 [1] : vector<1x16xf32> to vector<1xf32>
      %65 = vector.shape_cast %64 : vector<1xf32> to vector<1x1xf32>
      %c0_46 = arith.constant 0 : index
      %c0_47 = arith.constant 0 : index
      %66 = vector.load %arg7[%c0_46, %c0_47] : memref<1x1xf32, #tpu.memory_space<vmem>>, vector<1x1xf32>
      tpu.vector_store %arg7[%c0_46, %c0_47], %65 {strides = array<i32>} : memref<1x1xf32, #tpu.memory_space<vmem>>, vector<1x1xf32>,
    } else {
    }
    return
  }
  func.func @transform_0(%arg0: i32) -> (i32, i32) {
    %c0_i32 = arith.constant 0 : i32
    %c0_i32_0 = arith.constant 0 : i32
    return %arg0, %c0_i32 : i32, i32
  }
  func.func @transform_1(%arg0: i32) -> (i32, i32) {
    %c0_i32 = arith.constant 0 : i32
    %c0_i32_0 = arith.constant 0 : i32
    return %arg0, %c0_i32 : i32, i32
  }
  func.func @transform_2(%arg0: i32) -> (i32, i32) {
    %c0_i32 = arith.constant 0 : i32
    %c0_i32_0 = arith.constant 0 : i32
    return %arg0, %c0_i32 : i32, i32
  }
  func.func @transform_3(%arg0: i32) -> (i32, i32) {
    %c0_i32 = arith.constant 0 : i32
    %c0_i32_0 = arith.constant 0 : i32
    return %arg0, %c0_i32 : i32, i32
  }
  func.func @transform_4(%arg0: i32) -> (i32, i32) {
    %c0_i32 = arith.constant 0 : i32
    %c0_i32_0 = arith.constant 0 : i32
    %c0_i32_1 = arith.constant 0 : i32
    return %c0_i32, %c0_i32_0 : i32, i32
  }
  func.func @transform_5(%arg0: i32) -> (i32, i32) {
    %c0_i32 = arith.constant 0 : i32
    %c0_i32_0 = arith.constant 0 : i32
    %c0_i32_1 = arith.constant 0 : i32
    return %c0_i32, %c0_i32_0 : i32, i32
  }
  func.func @transform_6(%arg0: i32) -> (i32, i32) {
    %c0_i32 = arith.constant 0 : i32
    %c0_i32_0 = arith.constant 0 : i32
    %c0_i32_1 = arith.constant 0 : i32
    return %c0_i32, %c0_i32_0 : i32, i32
  }
}

</mosaic_0001>

<bundles_post_ra>
// kernel: ohem_loss.2
= control target key start
LH: loop header
LB: loop body
LE: loop exit
PB: predicated region body
PF: predicated region fallthrough
CT: control target
= control target key end

     0   :  { %12 = vsyncpa [#allocation6], 0  ;;  %s628_s0 = inlined_call_operand.hbm [shape: f32[32,16], index: 0, kind: input, shape index: {}]   ;;  %s629_s1 = inlined_call_operand.hbm [shape: f32[32,16], index: 1, kind: input, shape index: {}]   ;;  %s630_s2 = inlined_call_operand.hbm [shape: f32[32,16], index: 2, kind: input, shape index: {}]   ;;  %s631_s3 = inlined_call_operand.vmem [shape: f32[32,16], index: 3, kind: output, shape index: {0}]   ;;  %s632_s4 = inlined_call_operand.hbm [shape: f32[1,1], index: 4, kind: output, shape index: {1}]   ;;  %s633_s5 = inlined_call_operand.hbm [shape: f32[1,1], index: 5, kind: output, shape index: {2}]   ;;  %s634_s6 = inlined_call_operand.hbm [shape: f32[1,1], index: 6, kind: output, shape index: {3}]  }
   0x1   :  { %13 = vsyncpa [#allocation9], 0 }
   0x2   :  { %14 = vsyncpa [#allocation7], 0 }
   0x3   :  { %15 = vsyncpa [#allocation13], 0  ;;  %s446_s21 = smov [#allocation8]   ;;  %s447_s23 = smov [#allocation5]  }
   0x4   :  { %s33_s22 = sshll.u32 %s446_s21, 4  ;;  %s21_s24 = sshll.u32 %s447_s23, 4  ;;  %s34_s22 = int_to_ptr.vmem [resolvable:$true] %s33_s22  ;;  %s22_s24 = int_to_ptr.vmem [resolvable:$true] %s21_s24 }
   0x5   :  { %s326_s25 = scalar_lea.vmem %s34_s22, 512  ;;  %p331_p1 = scmp.lt.s32.totalorder %s34_s22, %s34_s22 }
   0x6   :  { %p327_p0 = scmp.ne.s32.totalorder %s34_s22, %s326_s25  ;;  %p332_p2 = scmp.lt.s32.totalorder %s326_s25, %s326_s25 }
   0x8   :  { %p333_p3 = por %p332_p2, %p331_p1 }
   0xa   :  { %p334_p4 = pnand %p333_p3, %p327_p0 }
   0xc   :  { %337 = shalt.err (!%p334_p4)
}
   0xd   :  { %s448_s26 = smov 128   ;;  %s449_s27 = smov 8  }
   0xe   :  { %39 = dma.hbm_to_vmem [thread:$0]  %s629_s1, 512, %s34_s22, [#allocation9], %s448_s26, %s448_s26, %s449_s27  }
   0xf   :  { %s346_s30 = scalar_lea.vmem %s22_s24, 512  ;;  %p351_p6 = scmp.lt.s32.totalorder %s22_s24, %s22_s24 }
  0x10   :  { %p347_p5 = scmp.ne.s32.totalorder %s22_s24, %s346_s30  ;;  %p352_p7 = scmp.lt.s32.totalorder %s346_s30, %s346_s30 }
  0x12   :  { %p353_p8 = por %p352_p7, %p351_p6 }
  0x14   :  { %p354_p9 = pnand %p353_p8, %p347_p5 }
  0x16   :  { %357 = shalt.err (!%p354_p9)
}
  0x17   :  { %27 = dma.hbm_to_vmem [thread:$0]  %s628_s0, 512, %s22_s24, [#allocation6], %s448_s26, %s448_s26, %s449_s27  }
  0x18   :  { %s450_s9 = smov [#allocation10]  }
  0x19   :  { %s45_s10 = sshll.u32 %s450_s9, 4  ;;  %s46_s10 = int_to_ptr.vmem [resolvable:$true] %s45_s10 }
  0x1a   :  { %s366_s11 = scalar_lea.vmem %s46_s10, 512  ;;  %p371_p11 = scmp.lt.s32.totalorder %s46_s10, %s46_s10 }
  0x1b   :  { %p367_p10 = scmp.ne.s32.totalorder %s46_s10, %s366_s11  ;;  %p372_p12 = scmp.lt.s32.totalorder %s366_s11, %s366_s11 }
  0x1d   :  { %p373_p13 = por %p372_p12, %p371_p11 }
  0x1f   :  { %p374_p0 = pnand %p373_p13, %p367_p10 }
  0x21   :  { %377 = shalt.err (!%p374_p0)
}
  0x22   :  { %51 = dma.hbm_to_vmem [thread:$0]  %s630_s2, 512, %s46_s10, [#allocation9], %s448_s26, %s448_s26, %s449_s27  }
  0x23   :  { %438 = dma.done.wait [#allocation6], 512  }
  0x24   :  { %439 = vsyncadd [#allocation6], 4294966784 }
  0x25   :  { %440 = dma.done.wait [#allocation9], 1024  }
  0x26   :  { %441 = vsyncadd [#allocation9], 4294966272  ;;  %vm65_vm0 = vcmask 122880   ;;  %v451_v0 = vmov 0.0   ;;  %v502_v1 = vld [vmem:[#allocation8] sm:$0xff]  ;;  %v504_v2 = vld [vmem:[#allocation8 + $0x8] sm:$0xff] }
  0x27   :  { %67 = vst.msk [vmem:[#allocation3] sm:$0x1] %vm65_vm0, %v451_v0  ;;  %66 = vst.msk [vmem:[#allocation2] sm:$0x1] %vm65_vm0, %v451_v0  ;;  %v506_v3 = vld [vmem:[#allocation8 + $0x10] sm:$0xff]  ;;  %v508_v4 = vld [vmem:[#allocation10] sm:$0xff] }
  0x28   :  { %68 = vst.msk [vmem:[#allocation4] sm:$0x1] %vm65_vm0, %v451_v0  ;;  %v510_v5 = vld [vmem:[#allocation10 + $0x8] sm:$0xff]  ;;  %vm169_vm1 = vcmask 130048   ;;  %v512_v6 = vld [vmem:[#allocation8 + $0x18] sm:$0xff]  ;;  %v514_v7 = vld [vmem:[#allocation10 + $0x10] sm:$0xff]  ;;  %v520_v9 = vmul.f32 %v508_v4, %v502_v1 }
  0x29   :  { %v516_v8 = vld [vmem:[#allocation10 + $0x18] sm:$0xff]  ;;  %v524_v10 = vmul.f32 %v510_v5, %v504_v2  ;;  %v212_v11 = vsel %vm169_vm1, %v508_v4, 0.0  ;;  %v530_v12 = vmul.f32 %v514_v7, %v506_v3  ;;  %v213_v14 = vsel %vm169_vm1, %v510_v5, 0.0  ;;  %v540_v16 = vld [vmem:[#allocation5] sm:$0xff]  ;;  %v542_v17 = vld [vmem:[#allocation5 + $0x8] sm:$0xff]  ;;  %s452_s19 = smov [#allocation12]  }
  0x2a   :  { %v534_v13 = vmul.f32 %v516_v8, %v512_v6  ;;  %v215_v15 = vsel %vm169_vm1, %v514_v7, 0.0  ;;  %v196_v18 = vsel %vm169_vm1, %v520_v9, 0.0  ;;  %v214_v20 = vadd.f32 %v213_v14, %v212_v11  ;;  %v550_v22 = vld [vmem:[#allocation5 + $0x10] sm:$0xff]  ;;  %v552_v23 = vld [vmem:[#allocation5 + $0x18] sm:$0xff]  ;;  %s453_s20 = smov [#allocation14]  }
  0x2b   :  { %v197_v19 = vsel %vm169_vm1, %v524_v10, 0.0  ;;  %v217_v21 = vsel %vm169_vm1, %v516_v8, 0.0  ;;  %v199_v25 = vsel %vm169_vm1, %v530_v12, 0.0  ;;  %v81_v27 = vand.u32 2147483647, %v540_v16  ;;  %s274_s21 = sshll.u32 %s453_s20, 4  ;;  %s275_s21 = int_to_ptr.vmem [resolvable:$true] %s274_s21 }
  0x2c   :  { %v198_v24 = vadd.f32 %v197_v19, %v196_v18  ;;  %v201_v26 = vsel %vm169_vm1, %v534_v13, 0.0  ;;  %v216_v28 = vadd.f32 %v215_v15, %v214_v20  ;;  %v82_v29 = vand.u32 2147483647, %v542_v17 }
  0x2d   :  { %v83_v30 = vand.u32 2147483647, %v550_v22  ;;  %v84_v31 = vand.u32 2147483647, %v552_v23  ;;  %v85_v33 = vsub.f32 0.0, %v81_v27  ;;  %v109_v27 = vmin.f32 %v540_v16, 0.0 }
  0x2e   :  { %v200_v32 = vadd.f32 %v199_v25, %v198_v24  ;;  %v218_v34 = vadd.f32 %v217_v21, %v216_v28  ;;  %v86_v35 = vsub.f32 0.0, %v82_v29  ;;  %v195_v54 = vld [vmem:[#allocation3] sm:$0x1]  ;;  %v121_v21 = vmax.f32 %v540_v16, 0.0 }
  0x2f   :  { %v87_v36 = vsub.f32 0.0, %v83_v30  ;;  %v88_v37 = vsub.f32 0.0, %v84_v31  ;;  %v89_v39 = vmul.f32 1.442695, %v85_v33  ;;  %v211_v53 = vld [vmem:[#allocation4] sm:$0x1] }
  0x30   :  { %v202_v38 = vadd.f32 %v201_v26, %v200_v32  ;;  %v219_v40 = vrot.slane %v218_v34, 4  ;;  %v91_v41 = vmul.f32 1.442695, %v86_v35  ;;  %v122_v24 = vmax.f32 %v542_v17, 0.0 }
  0x31   :  { %v93_v42 = vmul.f32 1.442695, %v87_v36  ;;  %302 = vpow2.f32 %v89_v39  ;;  %v95_v44 = vmul.f32 1.442695, %v88_v37  ;;  %v123_v25 = vmax.f32 %v550_v22, 0.0 }
  0x32   :  { %v203_v43 = vrot.slane %v202_v38, 4  ;;  %v220_v45 = vadd.f32 %v219_v40, %v218_v34  ;;  %304 = vpow2.f32 %v91_v41  ;;  %v124_v26 = vmax.f32 %v552_v23, 0.0 }
  0x33   :  { %306 = vpow2.f32 %v93_v42  ;;  %v125_v28 = vsub.f32 0.0, %v121_v21  ;;  %v110_v30 = vmin.f32 %v542_v17, 0.0  ;;  %v126_v31 = vsub.f32 0.0, %v122_v24 }
  0x34   :  { %v204_v46 = vadd.f32 %v203_v43, %v202_v38  ;;  %v221_v47 = vrot.slane %v220_v45, 2  ;;  %308 = vpow2.f32 %v95_v44  ;;  %v141_v33 = vsub.f32 1.0, %v502_v1 }
  0x35   :  { %v111_v35 = vmin.f32 %v550_v22, 0.0  ;;  %v127_v36 = vsub.f32 0.0, %v123_v25  ;;  %v142_v38 = vsub.f32 1.0, %v504_v2  ;;  %v112_v40 = vmin.f32 %v552_v23, 0.0 }
  0x36   :  { %v205_v48 = vrot.slane %v204_v46, 2  ;;  %v222_v49 = vadd.f32 %v221_v47, %v220_v45  ;;  %v128_v41 = vsub.f32 0.0, %v124_v26  ;;  %v143_v42 = vsub.f32 1.0, %v506_v3 }
  0x37   :  { %v144_v45 = vsub.f32 1.0, %v512_v6  ;;  %vm234_vm2 = vcmask 0  }
  0x38   :  { %v206_v50 = vadd.f32 %v205_v48, %v204_v46  ;;  %v223_v51 = vrot.slane %v222_v49, 1 }
  0x3a   :  { %v207_v52 = vrot.slane %v206_v50, 1  ;;  %v224_v55 = vadd.f32 %v223_v51, %v222_v49 }
  0x3c   :  { %v208_v56 = vadd.f32 %v207_v52, %v206_v50  ;;  %v225_v57 = vadd.f32 %v224_v55, %v211_v53 }
  0x3e   :  { %v209_v58 = vadd.f32 %v208_v56, %v195_v54  ;;  %v303_v59 = vpop.eup %302  ;;  %226 = vst.msk [vmem:[#allocation4] sm:$0x1] %vm65_vm0, %v225_v57 }
  0x3f   :  { %v305_v60 = vpop.eup %304  ;;  %v97_v61 = vadd.f32 1.0, %v303_v59 }
  0x40   :  { %210 = vst.msk [vmem:[#allocation3] sm:$0x1] %vm65_vm0, %v209_v58  ;;  %v307_v62 = vpop.eup %306  ;;  %v98_v63 = vadd.f32 1.0, %v305_v60 }
  0x41   :  { %v309_v0 = vpop.eup %308  ;;  %v99_v11 = vadd.f32 1.0, %v307_v62  ;;  %310 = vlog2.f32 %v97_v61 }
  0x42   :  { %v100_v14 = vadd.f32 1.0, %v309_v0  ;;  %312 = vlog2.f32 %v98_v63 }
  0x43   :  { %314 = vlog2.f32 %v99_v11 }
  0x44   :  { %316 = vlog2.f32 %v100_v14  ;;  %v161_v14 = vsub.f32 %v508_v4, %v520_v9 }
  0x45   :  { %v241_v15 = vld [vmem:[#allocation4] sm:$0x1] }
  0x46   :  { %v242_v19 = vsel %vm65_vm0, %v241_v15, 0.0 }
  0x47   :  { %v236_v18 = vld [vmem:[#allocation3] sm:$0x1]  ;;  %243 = vadd.xlane.f32.xlu1 %v242_v19 }
  0x48   :  { %v237_v20 = vsel %vm65_vm0, %v236_v18, 0.0 }
  0x49   :  { %238 = vadd.xlane.f32.xlu0 %v237_v20 }
  0x4e   :  { %v311_v29 = vpop.eup %310 }
  0x4f   :  { %v313_v32 = vpop.eup %312  ;;  %v102_v34 = vmul.f32 0.6931472, %v311_v29 }
  0x50   :  { %v315_v37 = vpop.eup %314  ;;  %v104_v39 = vmul.f32 0.6931472, %v313_v32 }
  0x51   :  { %v317_v16 = vpop.eup %316  ;;  %v106_v43 = vmul.f32 0.6931472, %v315_v37  ;;  %v113_v17 = vsub.f32 %v109_v27, %v102_v34  ;;  %v129_v44 = vsub.f32 %v125_v28, %v102_v34 }
  0x52   :  { %v108_v46 = vmul.f32 0.6931472, %v317_v16  ;;  %v114_v47 = vsub.f32 %v110_v30, %v104_v39  ;;  %v130_v48 = vsub.f32 %v126_v31, %v104_v39  ;;  %v174_v39 = vld [vmem:[#allocation2] sm:$0x1] }
  0x53   :  { %v115_v22 = vsub.f32 %v111_v35, %v106_v43  ;;  %v117_v49 = vmax.f32 %v113_v17, -100.0  ;;  %v131_v50 = vsub.f32 %v127_v36, %v106_v43  ;;  %v133_v51 = vmax.f32 %v129_v44, -100.0 }
  0x54   :  { %v116_v52 = vsub.f32 %v112_v40, %v108_v46  ;;  %v118_v53 = vmax.f32 %v114_v47, -100.0  ;;  %v132_v54 = vsub.f32 %v128_v41, %v108_v46  ;;  %v134_v23 = vmax.f32 %v130_v48, -100.0 }
  0x55   :  { %v119_v55 = vmax.f32 %v115_v22, -100.0  ;;  %v135_v56 = vmax.f32 %v131_v50, -100.0  ;;  %v137_v57 = vmul.f32 %v117_v49, %v502_v1  ;;  %v145_v58 = vmul.f32 %v141_v33, %v133_v51 }
  0x56   :  { %v120_v59 = vmax.f32 %v116_v52, -100.0  ;;  %v136_v60 = vmax.f32 %v132_v54, -100.0  ;;  %v138_v61 = vmul.f32 %v118_v53, %v504_v2  ;;  %v146_v62 = vmul.f32 %v142_v38, %v134_v23 }
  0x57   :  { %v139_v63 = vmul.f32 %v119_v55, %v506_v3  ;;  %v147_v0 = vmul.f32 %v143_v42, %v135_v56  ;;  %v149_v11 = vadd.f32 %v145_v58, %v137_v57  ;;  %v162_v1 = vsub.f32 %v510_v5, %v524_v10 }
  0x58   :  { %v140_v15 = vmul.f32 %v120_v59, %v512_v6  ;;  %v148_v18 = vmul.f32 %v144_v45, %v136_v60  ;;  %v150_v19 = vadd.f32 %v146_v62, %v138_v61  ;;  %v163_v2 = vsub.f32 %v514_v7, %v530_v12 }
  0x59   :  { %v151_v20 = vadd.f32 %v147_v0, %v139_v63  ;;  %v153_v21 = vsub.f32 0.0, %v149_v11  ;;  %v164_v3 = vsub.f32 %v516_v8, %v534_v13 }
  0x5a   :  { %v152_v24 = vadd.f32 %v148_v18, %v140_v15  ;;  %v154_v25 = vsub.f32 0.0, %v150_v19 }
  0x5b   :  { %v155_v26 = vsub.f32 0.0, %v151_v20  ;;  %v165_v27 = vmul.f32 %v161_v14, %v153_v21  ;;  %v175_v4 = vmul.f32 %v520_v9, %v153_v21 }
  0x5c   :  { %v156_v6 = vsub.f32 0.0, %v152_v24  ;;  %v166_v28 = vmul.f32 %v162_v1, %v154_v25  ;;  %v176_v29 = vmul.f32 %v524_v10, %v154_v25 }
  0x5d   :  { %v167_v30 = vmul.f32 %v163_v2, %v155_v26  ;;  %170 = vst.msk [vmem:[%s631_s3] sm:$0xff] %vm169_vm1, %v165_v27  ;;  %v177_v5 = vmul.f32 %v530_v12, %v155_v26  ;;  %v179_v7 = vsel %vm169_vm1, %v175_v4, 0.0 }
  0x5e   :  { %v168_v31 = vmul.f32 %v164_v3, %v156_v6  ;;  %171 = vst.msk [vmem:[%s631_s3 + $0x8] sm:$0xff] %vm169_vm1, %v166_v28  ;;  %v178_v8 = vmul.f32 %v534_v13, %v156_v6  ;;  %v180_v9 = vsel %vm169_vm1, %v176_v29, 0.0 }
  0x5f   :  { %172 = vst.msk [vmem:[%s631_s3 + $0x10] sm:$0xff] %vm169_vm1, %v167_v30  ;;  %v181_v10 = vadd.f32 %v180_v9, %v179_v7  ;;  %v182_v12 = vsel %vm169_vm1, %v177_v5, 0.0 }
  0x60   :  { %173 = vst.msk [vmem:[%s631_s3 + $0x18] sm:$0xff] %vm169_vm1, %v168_v31  ;;  %v184_v32 = vsel %vm169_vm1, %v178_v8, 0.0  ;;  %s264_s3 = sshll.u32 %s452_s19, 4  ;;  %s265_s3 = int_to_ptr.vmem [resolvable:$true] %s264_s3 }
  0x61   :  { %v183_v33 = vadd.f32 %v182_v12, %v181_v10  ;;  %s378_s22 = scalar_lea.vmem %s265_s3, 16  ;;  %s382_s23 = scalar_lea.vmem %s265_s3, 32 }
  0x62   :  { %p379_p1 = scmp.ne.s32.totalorder %s265_s3, %s378_s22  ;;  %p383_p2 = scmp.lt.s32.totalorder %s265_s3, %s265_s3 }
  0x63   :  { %v185_v34 = vadd.f32 %v184_v32, %v183_v33  ;;  %p384_p3 = scmp.lt.s32.totalorder %s382_s23, %s378_s22 }
  0x65   :  { %v186_v13 = vrot.slane %v185_v34, 4  ;;  %p385_p4 = por %p384_p3, %p383_p2 }
  0x67   :  { %v187_v35 = vadd.f32 %v186_v13, %v185_v34  ;;  %p386_p5 = pnand %p385_p4, %p379_p1 }
  0x69   :  { %v188_v36 = vrot.slane %v187_v35, 2 }
  0x6b   :  { %v189_v37 = vadd.f32 %v188_v36, %v187_v35 }
  0x6d   :  { %v190_v38 = vrot.slane %v189_v37, 1 }
  0x6f   :  { %v191_v40 = vadd.f32 %v190_v38, %v189_v37 }
  0x71   :  { %v192_v41 = vadd.f32 %v191_v40, %v174_v39 }
  0x73   :  { %194 = vst.msk [vmem:[#allocation2] sm:$0x1] %vm65_vm0, %v192_v41 }
  0x7a   :  { %v230_v16 = vld [vmem:[#allocation2] sm:$0x1] }
  0x7b   :  { %v231_v42 = vsel %vm65_vm0, %v230_v16, 0.0 }
  0x7c   :  { %232 = vadd.xlane.f32.xlu0 %v231_v42 }
  0xd0   :  { %v244_v43 = vpop.xlane.xlu1 %243 }
  0xd1   :  { %245 = vst.msk [vmem:[#allocation14] sm:$0x1] %vm234_vm2, %v244_v43 }
  0xd2   :  { %v239_v17 = vpop.xlane.xlu0 %238 }
  0xd3   :  { %240 = vst.msk [vmem:[#allocation12] sm:$0x1] %vm234_vm2, %v239_v17 }
  0xd4   :  { %389 = shalt.err (!%p386_p5)
}
  0xd5   :  { %267 = dma.vmem_to_hbm [thread:$0]  %s265_s3, 16, %s633_s5, [#allocation13]  }
  0xd6   :  { %s398_s26 = scalar_lea.vmem %s275_s21, 16  ;;  %s402_s27 = scalar_lea.vmem %s275_s21, 32 }
  0xd7   :  { %p399_p6 = scmp.ne.s32.totalorder %s275_s21, %s398_s26  ;;  %p403_p7 = scmp.lt.s32.totalorder %s275_s21, %s275_s21 }
  0xd8   :  { %p404_p8 = scmp.lt.s32.totalorder %s402_s27, %s398_s26 }
  0xda   :  { %p405_p9 = por %p404_p8, %p403_p7 }
  0xdc   :  { %p406_p10 = pnand %p405_p9, %p399_p6 }
  0xde   :  { %409 = shalt.err (!%p406_p10)
}
  0xdf   :  { %277 = dma.vmem_to_hbm [thread:$0]  %s275_s21, 16, %s634_s6, [#allocation13]  }
  0xe0   :  { %s454_s30 = smov [#allocation11]  }
  0xe1   :  { %s254_s7 = sshll.u32 %s454_s30, 4  ;;  %s255_s7 = int_to_ptr.vmem [resolvable:$true] %s254_s7 }
  0xe2   :  { %s418_s8 = scalar_lea.vmem %s255_s7, 16  ;;  %s422_s5 = scalar_lea.vmem %s255_s7, 32 }
  0xe3   :  { %p419_p11 = scmp.ne.s32.totalorder %s255_s7, %s418_s8  ;;  %p423_p12 = scmp.lt.s32.totalorder %s255_s7, %s255_s7 }
  0xe4   :  { %p424_p13 = scmp.lt.s32.totalorder %s422_s5, %s418_s8 }
  0xe6   :  { %p425_p0 = por %p424_p13, %p423_p12 }
  0xe8   :  { %p426_p1 = pnand %p425_p0, %p419_p11 }
 0x105   :  { %v233_v44 = vpop.xlane.xlu0 %232 }
 0x106   :  { %235 = vst.msk [vmem:[#allocation11] sm:$0x1] %vm234_vm2, %v233_v44 }
 0x107   :  { %429 = shalt.err (!%p426_p1)
}
 0x108   :  { %257 = dma.vmem_to_hbm [thread:$0]  %s255_s7, 16, %s632_s4, [#allocation7]  }
 0x109   :  { %442 = dma.done.wait [#allocation7], 16  }
 0x10a   :  { %443 = vsyncadd [#allocation7], 4294967280 }
 0x10b   :  { %444 = dma.done.wait [#allocation13], 32  }
 0x10c   :  { %445 = vsyncadd [#allocation13], 4294967264 }
 0x10d   :  { %289 = vsyncpa [#allocation6], 1 }
 0x10e   :  { %290 = vsyncpa [#allocation9], 1 }
 0x10f   :  { %291 = vsyncpa [#allocation7], 1 }
 0x110   :  { %292 = vsyncpa [#allocation13], 1 }

// kernel: closed_call.9
= control target key start
LH: loop header
LB: loop body
LE: loop exit
PB: predicated region body
PF: predicated region fallthrough
CT: control target
= control target key end

     0   :  { %11 = vsyncpa [#allocation8], 0  ;;  %vm19_vm0 = vcmask 122880   ;;  %vm50_vm1 = vcmask 130048   ;;  %v247_v4 = vmov 0.0   ;;  %s331_s0 = inlined_call_operand.<no memory space> [shape: s32[1], index: 0, kind: input, shape index: {}]   ;;  %s332_s1 = inlined_call_operand.vmem [shape: f32[32,16], index: 1, kind: input, shape index: {}]   ;;  %s333_s2 = inlined_call_operand.hbm [shape: f32[1,1], index: 2, kind: output, shape index: {0}]   ;;  %s334_s3 = inlined_call_operand.hbm [shape: f32[1,1], index: 3, kind: output, shape index: {1}]   ;;  %s335_s4 = inlined_call_operand.hbm [shape: f32[1,1], index: 4, kind: output, shape index: {2}]  }
   0x1   :  { %v23_v0 = vld [vmem:[%s332_s1] sm:$0xff]  ;;  %v24_v1 = vld [vmem:[%s332_s1 + $0x8] sm:$0xff]  ;;  %v25_v2 = vld [vmem:[%s332_s1 + $0x10] sm:$0xff]  ;;  %v32_v3 = vstv %s331_s0  ;;  %21 = vst.msk [vmem:[#allocation3] sm:$0x1] %vm19_vm0, %v247_v4 }
   0x2   :  { %v26_v5 = vld [vmem:[%s332_s1 + $0x18] sm:$0xff]  ;;  %vm37_vm2 = vcmp.gt.s32.totalorder %v23_v0, %v32_v3  ;;  %vm38_vm3 = vcmp.gt.s32.totalorder %v24_v1, %v32_v3  ;;  %vm39_vm4 = vcmp.gt.s32.totalorder %v25_v2, %v32_v3  ;;  %20 = vst.msk [vmem:[#allocation2] sm:$0x1] %vm19_vm0, %v247_v4  ;;  %22 = vst.msk [vmem:[#allocation4] sm:$0x1] %vm19_vm0, %v247_v4 }
   0x3   :  { %vm33_vm5 = vcmp.ge.s32.totalorder %v23_v0, %v32_v3 }
   0x4   :  { %12 = vsyncpa [#allocation10], 0  ;;  %vm40_vm6 = vcmp.gt.s32.totalorder %v26_v5, %v32_v3  ;;  %v175_v6 = vsel %vm37_vm2, 1.0, %v247_v4  ;;  %v176_v7 = vsel %vm38_vm3, 1.0, %v247_v4  ;;  %v177_v8 = vsel %vm39_vm4, 1.0, %v247_v4  ;;  %s248_s0 = smov [#allocation9]  }
   0x5   :  { %v178_v9 = vsel %vm40_vm6, 1.0, %v247_v4  ;;  %v76_v10 = vsel %vm50_vm1, %v175_v6, 0.0  ;;  %v77_v11 = vsel %vm50_vm1, %v176_v7, 0.0  ;;  %v79_v12 = vsel %vm50_vm1, %v177_v8, 0.0  ;;  %s146_s1 = sshll.u32 %s248_s0, 4  ;;  %s249_s25 = smov [#allocation11]   ;;  %s147_s1 = int_to_ptr.vmem [resolvable:$true] %s146_s1 }
   0x6   :  { %v78_v13 = vadd.f32 %v77_v11, %v76_v10  ;;  %v81_v14 = vsel %vm50_vm1, %v178_v9, 0.0  ;;  %v92_v15 = vsel %vm37_vm2, %v23_v0, 0.0  ;;  %v93_v16 = vsel %vm38_vm3, %v24_v1, 0.0  ;;  %s156_s26 = sshll.u32 %s249_s25, 4  ;;  %s183_s27 = scalar_lea.vmem %s147_s1, 16  ;;  %s157_s26 = int_to_ptr.vmem [resolvable:$true] %s156_s26 }
   0x7   :  { %v94_v17 = vsel %vm39_vm4, %v25_v2, 0.0  ;;  %v95_v18 = vsel %vm40_vm6, %v26_v5, 0.0  ;;  %v96_v19 = vsel %vm50_vm1, %v92_v15, 0.0  ;;  %v97_v20 = vsel %vm50_vm1, %v93_v16, 0.0  ;;  %p184_p0 = scmp.ne.s32.totalorder %s147_s1, %s183_s27  ;;  %s187_s28 = scalar_lea.vmem %s147_s1, 32 }
   0x8   :  { %v80_v21 = vadd.f32 %v79_v12, %v78_v13  ;;  %v98_v22 = vadd.f32 %v97_v20, %v96_v19  ;;  %v99_v23 = vsel %vm50_vm1, %v94_v17, 0.0  ;;  %v101_v24 = vsel %vm50_vm1, %v95_v18, 0.0  ;;  %v67_v49 = vld [vmem:[#allocation3] sm:$0x1]  ;;  %p188_p1 = scmp.lt.s32.totalorder %s147_s1, %s147_s1  ;;  %p189_p2 = scmp.lt.s32.totalorder %s187_s28, %s183_s27 }
   0x9   :  { %vm34_vm7 = vcmp.ge.s32.totalorder %v24_v1, %v32_v3  ;;  %vm35_vm8 = vcmp.ge.s32.totalorder %v25_v2, %v32_v3  ;;  %vm36_vm9 = vcmp.ge.s32.totalorder %v26_v5, %v32_v3  ;;  %v171_v25 = vsel %vm33_vm5, 1.0, %v247_v4  ;;  %v91_v53 = vld [vmem:[#allocation4] sm:$0x1]  ;;  %v41_v60 = vld [vmem:[#allocation2] sm:$0x1] }
   0xa   :  { %v82_v26 = vadd.f32 %v81_v14, %v80_v21  ;;  %v100_v27 = vadd.f32 %v99_v23, %v98_v22  ;;  %v172_v28 = vsel %vm34_vm7, 1.0, %v247_v4  ;;  %v173_v29 = vsel %vm35_vm8, 1.0, %v247_v4  ;;  %p190_p3 = por %p189_p2, %p188_p1 }
   0xb   :  { %v174_v30 = vsel %vm36_vm9, 1.0, %v247_v4  ;;  %v51_v31 = vsel %vm50_vm1, %v171_v25, 0.0  ;;  %v52_v34 = vsel %vm50_vm1, %v172_v28, 0.0  ;;  %v54_v35 = vsel %vm50_vm1, %v173_v29, 0.0 }
   0xc   :  { %v83_v32 = vrot.slane %v82_v26, 4  ;;  %v102_v33 = vadd.f32 %v101_v24, %v100_v27  ;;  %v53_v36 = vadd.f32 %v52_v34, %v51_v31  ;;  %v56_v39 = vsel %vm50_vm1, %v174_v30, 0.0  ;;  %p191_p4 = pnand %p190_p3, %p184_p0 }
   0xd   :  { %vm118_vm10 = vcmask 0  }
   0xe   :  { %v84_v37 = vadd.f32 %v83_v32, %v82_v26  ;;  %v103_v38 = vrot.slane %v102_v33, 4  ;;  %v55_v40 = vadd.f32 %v54_v35, %v53_v36 }
  0x10   :  { %v85_v41 = vrot.slane %v84_v37, 2  ;;  %v104_v42 = vadd.f32 %v103_v38, %v102_v33  ;;  %v57_v43 = vadd.f32 %v56_v39, %v55_v40 }
  0x12   :  { %v86_v44 = vadd.f32 %v85_v41, %v84_v37  ;;  %v105_v45 = vrot.slane %v104_v42, 2  ;;  %v58_v46 = vrot.slane %v57_v43, 4 }
  0x14   :  { %v87_v47 = vrot.slane %v86_v44, 1  ;;  %v106_v48 = vadd.f32 %v105_v45, %v104_v42  ;;  %v59_v50 = vadd.f32 %v58_v46, %v57_v43 }
  0x16   :  { %v88_v51 = vadd.f32 %v87_v47, %v86_v44  ;;  %v107_v52 = vrot.slane %v106_v48, 1  ;;  %v60_v54 = vrot.slane %v59_v50, 2 }
  0x18   :  { %v89_v55 = vadd.f32 %v88_v51, %v67_v49  ;;  %v108_v56 = vadd.f32 %v107_v52, %v106_v48  ;;  %v61_v57 = vadd.f32 %v60_v54, %v59_v50 }
  0x1a   :  { %90 = vst.msk [vmem:[#allocation3] sm:$0x1] %vm19_vm0, %v89_v55  ;;  %v109_v58 = vadd.f32 %v108_v56, %v91_v53  ;;  %v62_v59 = vrot.slane %v61_v57, 1 }
  0x1c   :  { %110 = vst.msk [vmem:[#allocation4] sm:$0x1] %vm19_vm0, %v109_v58  ;;  %v63_v61 = vadd.f32 %v62_v59, %v61_v57 }
  0x1e   :  { %v64_v62 = vadd.f32 %v63_v61, %v41_v60 }
  0x20   :  { %66 = vst.msk [vmem:[#allocation2] sm:$0x1] %vm19_vm0, %v64_v62 }
  0x21   :  { %v120_v63 = vld [vmem:[#allocation3] sm:$0x1] }
  0x22   :  { %v121_v0 = vsel %vm19_vm0, %v120_v63, 0.0 }
  0x23   :  { %122 = vadd.xlane.f32.xlu0 %v121_v0  ;;  %v125_v1 = vld [vmem:[#allocation4] sm:$0x1] }
  0x24   :  { %v126_v2 = vsel %vm19_vm0, %v125_v1, 0.0 }
  0x25   :  { %127 = vadd.xlane.f32.xlu1 %v126_v2 }
  0x27   :  { %v114_v3 = vld [vmem:[#allocation2] sm:$0x1] }
  0x28   :  { %v115_v4 = vsel %vm19_vm0, %v114_v3, 0.0 }
  0x29   :  { %116 = vadd.xlane.f32.xlu0 %v115_v4 }
  0xac   :  { %v123_v5 = vpop.xlane.xlu0 %122 }
  0xad   :  { %124 = vst.msk [vmem:[#allocation9] sm:$0x1] %vm118_vm10, %v123_v5 }
  0xae   :  { %v128_v6 = vpop.xlane.xlu1 %127 }
  0xaf   :  { %194 = shalt.err (!%p191_p4)
}
  0xb0   :  { %149 = dma.vmem_to_hbm [thread:$0]  %s147_s1, 16, %s334_s3, [#allocation10]   ;;  %129 = vst.msk [vmem:[#allocation11] sm:$0x1] %vm118_vm10, %v128_v6 }
  0xb1   :  { %s250_s5 = smov [#allocation7]   ;;  %s203_s7 = scalar_lea.vmem %s157_s26, 16 }
  0xb2   :  { %s136_s6 = sshll.u32 %s250_s5, 4  ;;  %p204_p5 = scmp.ne.s32.totalorder %s157_s26, %s203_s7  ;;  %s137_s6 = int_to_ptr.vmem [resolvable:$true] %s136_s6 }
  0xb3   :  { %s207_s8 = scalar_lea.vmem %s157_s26, 32  ;;  %p208_p6 = scmp.lt.s32.totalorder %s157_s26, %s157_s26 }
  0xb4   :  { %p209_p7 = scmp.lt.s32.totalorder %s207_s8, %s203_s7 }
  0xb6   :  { %p210_p8 = por %p209_p7, %p208_p6 }
  0xb8   :  { %p211_p9 = pnand %p210_p8, %p204_p5 }
  0xba   :  { %214 = shalt.err (!%p211_p9)
}
  0xbb   :  { %159 = dma.vmem_to_hbm [thread:$0]  %s157_s26, 16, %s335_s4, [#allocation10]   ;;  %v117_v7 = vpop.xlane.xlu0 %116 }
  0xbc   :  { %119 = vst.msk [vmem:[#allocation7] sm:$0x1] %vm118_vm10, %v117_v7  ;;  %s223_s3 = scalar_lea.vmem %s137_s6, 16  ;;  %s227_s11 = scalar_lea.vmem %s137_s6, 32 }
  0xbd   :  { %p224_p10 = scmp.ne.s32.totalorder %s137_s6, %s223_s3  ;;  %p228_p11 = scmp.lt.s32.totalorder %s137_s6, %s137_s6 }
  0xbe   :  { %p229_p12 = scmp.lt.s32.totalorder %s227_s11, %s223_s3 }
  0xc0   :  { %p230_p13 = por %p229_p12, %p228_p11 }
  0xc2   :  { %p231_p0 = pnand %p230_p13, %p224_p10 }
  0xc4   :  { %234 = shalt.err (!%p231_p0)
}
  0xc5   :  { %139 = dma.vmem_to_hbm [thread:$0]  %s137_s6, 16, %s333_s2, [#allocation8]  }
  0xc6   :  { %243 = dma.done.wait [#allocation8], 16  }
  0xc7   :  { %244 = vsyncadd [#allocation8], 4294967280 }
  0xc8   :  { %245 = dma.done.wait [#allocation10], 32  }
  0xc9   :  { %246 = vsyncadd [#allocation10], 4294967264 }
  0xca   :  { %169 = vsyncpa [#allocation8], 1 }
  0xcb   :  { %170 = vsyncpa [#allocation10], 1 }

</bundles_post_ra>
